<compile_context>
chip_gen: v5e
topology: v5e:2x2
jax: 0.10.0
libtpu: 0.0.40
codegen_flags: <defaults>
</compile_context>

<pallas_src>
import functools

import jax
import jax.numpy as jnp
from jax.experimental import pallas as pl
from jax.experimental.pallas import tpu as pltpu

BN_EPS = 1e-5
LANE = 128
SUBLANE = 8


def _ceil_to(x, m):
    return ((x + m - 1) // m) * m


# ---------------------------------------------------------------------------
# Generation-aware VMEM budgeting (don't size v5e/v6e's 128 MiB for v7x's 64 MiB)
# ---------------------------------------------------------------------------
@functools.lru_cache(maxsize=None)
def _vmem_config():
    try:
        cap = int(pltpu.get_tpu_info().vmem_capacity_bytes)
    except Exception:  # interpret mode / older jax: assume the smallest part
        cap = 64 << 20
    limit = min(int(cap * 0.75), 100 << 20)        # vmem_limit_bytes for Mosaic
    budget = max(limit - (16 << 20), 16 << 20)     # working-set target for tiling
    tile_m_max = 1024 if cap >= (100 << 20) else 512
    return budget, limit, tile_m_max


# ---------------------------------------------------------------------------
# Pallas kernels
# ---------------------------------------------------------------------------
def _conv_stats_kernel(p_ref, w_ref, conv_ref, sum_ref, ssq_ref, acc_ref):
    """bf16 im2col matmul, f32 accumulation over the K grid axis.

    On the last K step the conv tile is stored in bf16 and the BN partial
    sums (f32, from the unrounded accumulator) are emitted.
    """
    k = pl.program_id(1)

    @pl.when(k == 0)
    def _():
        acc_ref[...] = jnp.zeros_like(acc_ref)

    acc_ref[...] += jnp.dot(p_ref[...], w_ref[...],
                            preferred_element_type=jnp.float32)

    @pl.when(k == pl.num_programs(1) - 1)
    def _():
        acc = acc_ref[...]
        conv_ref[...] = acc.astype(conv_ref.dtype)
        sum_ref[...] = jnp.sum(acc, axis=0, keepdims=True)
        ssq_ref[...] = jnp.sum(acc * acc, axis=0, keepdims=True)


def _bn_relu_kernel(conv_ref, scale_ref, shift_ref, o_ref):
    """Apply folded BN (scale/shift) + ReLU."""
    y = conv_ref[...].astype(jnp.float32) * scale_ref[...] + shift_ref[...]
    o_ref[...] = jnp.maximum(y, 0.0).astype(o_ref.dtype)


def _bn_relu_add_kernel(conv_ref, scale_ref, shift_ref, res_ref, o_ref):
    """Apply folded BN + ReLU, then fused residual add (block epilogue)."""
    y = conv_ref[...].astype(jnp.float32) * scale_ref[...] + shift_ref[...]
    y = jnp.maximum(y, 0.0) + res_ref[...].astype(jnp.float32)
    o_ref[...] = y.astype(o_ref.dtype)


# ---------------------------------------------------------------------------
# Glue (im2col / residual prep / stat finalize stay in plain JAX)
# ---------------------------------------------------------------------------
def _im2col(x_nhwc, stride):
    """3x3, padding=1 patch extraction. Returns (N*Ho*Wo, 9*Cin), Ho, Wo."""
    N, H, W, C = x_nhwc.shape
    Ho = (H + 2 - 3) // stride + 1
    Wo = (W + 2 - 3) // stride + 1
    xp = jnp.pad(x_nhwc, ((0, 0), (1, 1), (1, 1), (0, 0)))
    cols = []
    for kh in range(3):
        for kw in range(3):
            sl = xp[:, kh:kh + stride * (Ho - 1) + 1:stride,
                       kw:kw + stride * (Wo - 1) + 1:stride, :]
            cols.append(sl)
    patches = jnp.concatenate(cols, axis=-1)          # (N, Ho, Wo, 9*C)
    return patches.reshape(N * Ho * Wo, 9 * C), Ho, Wo


def _conv_vmem_bytes(tile_m, tile_k, cp):
    patches = 2 * tile_m * tile_k * 2    # bf16, double-buffered
    weights = 2 * tile_k * cp * 2        # bf16, double-buffered
    conv = 2 * tile_m * cp * 2           # bf16 output, double-buffered
    stats = 2 * 2 * cp * 4               # two (1, cp) f32 partials, double-buffered
    acc = tile_m * cp * 4                # f32 accumulator scratch (single)
    return patches + weights + conv + stats + acc


def _pick_tiles(M, Kp, Cp, budget, tile_m_max):
    """Choose (tile_m, tile_k): split K before shrinking M below MXU-friendly sizes."""
    q = Kp // LANE
    k_choices = sorted({LANE * d for d in range(1, q + 1) if q % d == 0},
                       reverse=True)                   # multiples of 128 dividing Kp
    tile_m = min(tile_m_max, _ceil_to(M, SUBLANE))
    ki = 0
    while _conv_vmem_bytes(tile_m, k_choices[ki], Cp) > budget:
        if ki + 1 < len(k_choices) and k_choices[ki] > 4 * LANE:
            ki += 1                                    # split K first
        elif tile_m > 256:
            tile_m = _ceil_to(tile_m // 2, SUBLANE)    # then shrink M (floor 256)
        elif ki + 1 < len(k_choices):
            ki += 1
        elif tile_m > SUBLANE:
            tile_m = _ceil_to(tile_m // 2, SUBLANE)
        else:
            break
    return tile_m, k_choices[ki]


def _conv_bn_relu(x_nhwc, w_hwio, gamma, beta, stride, *, out_dtype,
                  residual_flat=None):
    """SandwichLayer: conv3x3(no bias) -> BN(batch stats) -> ReLU [-> + residual].

    Returns an NHWC (N, Ho, Wo, Cout) tensor of dtype `out_dtype`.
    """
    budget, vmem_limit, tile_m_max = _vmem_config()

    N = x_nhwc.shape[0]
    Cout = w_hwio.shape[-1]
    K = 9 * x_nhwc.shape[-1]

    # im2col in bf16 (halves the patches HBM stream, feeds the MXU bf16).
    # TODO(synk): build the patches in-kernel from a haloed NHWC row band via
    # manual make_async_copy to remove the 9x im2col HBM stream; kept in XLA here
    # because the strided sublane slices / (Ho*Wo) reshapes it needs are not
    # robust across the small-channel shapes this block must support.
    patches, Ho, Wo = _im2col(x_nhwc.astype(jnp.bfloat16), stride)
    M = patches.shape[0]

    Cp = _ceil_to(Cout, LANE)                   # lane-dense channels
    Kp = _ceil_to(K, LANE)                      # lane-dense contraction dim

    tile_m, tile_k = _pick_tiles(M, Kp, Cp, budget, tile_m_max)
    Mp = _ceil_to(M, tile_m)
    gm = Mp // tile_m
    gk = Kp // tile_k

    # Zero-pad: padded rows/cols contribute 0 to the conv and to the BN sums.
    patches = jnp.pad(patches, ((0, Mp - M), (0, Kp - K)))
    w2 = w_hwio.reshape(K, Cout).astype(jnp.bfloat16)
    w2 = jnp.pad(w2, ((0, Kp - K), (0, Cp - Cout)))

    cparams1 = pltpu.CompilerParams(
        dimension_semantics=("parallel", "arbitrary"),
        vmem_limit_bytes=vmem_limit)

    # Pass 1: tiled matmul (K split, f32 VMEM accumulator) + BN partial sums.
    conv_out, sums, ssqs = pl.pallas_call(
        _conv_stats_kernel,
        grid=(gm, gk),
        in_specs=[pl.BlockSpec((tile_m, tile_k), lambda i, k: (i, k)),
                  # TODO(synk): pipeline_mode=pl.Buffered(1) when gk == 1 (weight
                  # block index is constant) to reclaim the dead second buffer.
                  pl.BlockSpec((tile_k, Cp), lambda i, k: (k, 0))],
        out_specs=[pl.BlockSpec((tile_m, Cp), lambda i, k: (i, 0)),
                   pl.BlockSpec((None, 1, Cp), lambda i, k: (i, 0, 0)),
                   pl.BlockSpec((None, 1, Cp), lambda i, k: (i, 0, 0))],
        out_shape=[jax.ShapeDtypeStruct((Mp, Cp), jnp.bfloat16),
                   jax.ShapeDtypeStruct((gm, 1, Cp), jnp.float32),
                   jax.ShapeDtypeStruct((gm, 1, Cp), jnp.float32)],
        scratch_shapes=[pltpu.VMEM((tile_m, Cp), jnp.float32)],
        compiler_params=cparams1,
    )(patches, w2)

    # Finalize BN statistics (tiny (gm, 1, Cp) reductions) and fold into
    # per-channel scale/shift, all in f32.
    mean = jnp.sum(sums, axis=(0, 1)) / M                     # divide by true M
    var = jnp.maximum(jnp.sum(ssqs, axis=(0, 1)) / M - mean * mean, 0.0)
    gpad = jnp.pad(gamma.astype(jnp.float32), (0, Cp - Cout), constant_values=1.0)
    bpad = jnp.pad(beta.astype(jnp.float32), (0, Cp - Cout))
    scale_v = gpad * jax.lax.rsqrt(var + BN_EPS)
    shift_v = bpad - mean * scale_v
    scale = scale_v.reshape(1, Cp)
    shift = shift_v.reshape(1, Cp)

    # Pass 2: apply scale/shift + ReLU (+ fused residual add).
    row_spec = pl.BlockSpec((tile_m, Cp), lambda i: (i, 0))
    vec_spec = pl.BlockSpec((1, Cp), lambda i: (0, 0))
    out_shape = jax.ShapeDtypeStruct((Mp, Cp), out_dtype)
    cparams2 = pltpu.CompilerParams(dimension_semantics=("parallel",),
                                    vmem_limit_bytes=vmem_limit)

    if residual_flat is None:
        out = pl.pallas_call(
            _bn_relu_kernel,
            grid=(gm,),
            in_specs=[row_spec, vec_spec, vec_spec],
            out_specs=row_spec,
            out_shape=out_shape,
            compiler_params=cparams2,
        )(conv_out, scale, shift)
    else:
        assert residual_flat.shape[0] == M, (residual_flat.shape, M)
        # Residual in bf16: halves its HBM read in the fused epilogue.
        res_p = jnp.pad(residual_flat.astype(jnp.bfloat16),
                        ((0, Mp - M), (0, Cp - residual_flat.shape[1])))
        out = pl.pallas_call(
            _bn_relu_add_kernel,
            grid=(gm,),
            in_specs=[row_spec, vec_spec, vec_spec, row_spec],
            out_specs=row_spec,
            out_shape=out_shape,
            compiler_params=cparams2,
        )(conv_out, scale, shift, res_p)

    # Carry the lane-dense padded layout through when it is already exact
    # (real ResNet channel counts); only slice when padding was actually added.
    if Mp == M and Cp == Cout:
        out_flat = out
    else:
        out_flat = out[:M, :Cout]
    return out_flat.reshape(N, Ho, Wo, Cout)


def resnet_block_forward(x_nchw, params, in_size, in_channels, out_size, out_channels):
    stride = 2 if out_size == in_size // 2 else 1
    assert out_size == (in_size // 2 if stride == 2 else in_size), (
        "unsupported in_size/out_size combination", in_size, out_size)

    x = jnp.transpose(x_nchw, (0, 2, 3, 1)).astype(jnp.float32)   # NCHW -> NHWC
    N = x.shape[0]

    # sandwich1: conv -> BN -> ReLU (kept bf16: it only feeds the next bf16 matmul)
    h1 = _conv_bn_relu(x, params["w1"], params["g1"], params["b1"], stride,
                       out_dtype=jnp.bfloat16)

    # Residual path prep (pure elementwise, fused by XLA into one producer).
    # TODO(synk): fold the 2x2 avg-pool / channel zero-pad into the apply-kernel
    # BlockSpec to read the raw residual exactly once from HBM.
    residual = x
    if out_channels == in_channels * 2:
        pad = in_channels // 2
        residual = jnp.pad(residual, ((0, 0), (0, 0), (0, 0), (pad, pad)))
    if out_size == in_size // 2:
        residual = 0.25 * (residual[:, 0:2 * out_size:2, 0:2 * out_size:2, :]
                           + residual[:, 0:2 * out_size:2, 1:2 * out_size:2, :]
                           + residual[:, 1:2 * out_size:2, 0:2 * out_size:2, :]
                           + residual[:, 1:2 * out_size:2, 1:2 * out_size:2, :])
    assert residual.shape[-1] == out_channels, (
        "residual/out channel mismatch", residual.shape[-1], out_channels)
    res_flat = residual.reshape(N * out_size * out_size, out_channels)

    # sandwich2 + fused residual add in the apply-pass epilogue (no ReLU after add,
    # matching the reference).
    out = _conv_bn_relu(h1, params["w2"], params["g2"], params["b2"], 1,
                        out_dtype=jnp.float32, residual_flat=res_flat)

    return jnp.transpose(out, (0, 3, 1, 2))                        # NHWC -> NCHW


# ---------------------------------------------------------------------------
# Deterministic parameter init (shapes from ResNetBlock.__init__)
# ---------------------------------------------------------------------------
def init_params(key, in_channels, out_channels):
    k1, k2 = jax.random.split(key, 2)
    fan1 = 3 * 3 * in_channels
    fan2 = 3 * 3 * out_channels
    return {
        "w1": jax.random.normal(k1, (3, 3, in_channels, out_channels), jnp.float32)
               * (2.0 / fan1) ** 0.5,
        "g1": jnp.ones((out_channels,), jnp.float32),   # BN weight default = 1
        "b1": jnp.zeros((out_channels,), jnp.float32),  # BN bias   default = 0
        "w2": jax.random.normal(k2, (3, 3, out_channels, out_channels), jnp.float32)
               * (2.0 / fan2) ** 0.5,
        "g2": jnp.ones((out_channels,), jnp.float32),
        "b2": jnp.zeros((out_channels,), jnp.float32),
    }


if __name__ == "__main__":
    # Downsampling / channel-doubling block: exercises stride-2 conv,
    # channel zero-padding of the residual, and the 2x2 avg-pool.
    batch, in_channels, in_size = 2, 4, 16
    out_channels, out_size = 8, 8

    key = jax.random.PRNGKey(0)
    kx, kp = jax.random.split(key)
    x = jax.random.normal(kx, (batch, in_channels, in_size, in_size), jnp.float32)
    params = init_params(kp, in_channels, out_channels)

    fwd = jax.jit(functools.partial(
        resnet_block_forward, in_size=in_size, in_channels=in_channels,
        out_size=out_size, out_channels=out_channels))

    out = jax.block_until_ready(fwd(x, params))

    assert out.shape == (batch, out_channels, out_size, out_size), out.shape
    assert bool(jnp.all(jnp.isfinite(out)))
    print("KERNEL_OK")
</pallas_src>

<mosaic_0001>
module attributes {stable_mosaic.version = 11 : i64} {
  func.func @_bn_relu_kernel(%arg0: i32, %arg1: memref<128x128xbf16, #tpu.memory_space<vmem>>, %arg2: memref<1x128xf32, #tpu.memory_space<vmem>>, %arg3: memref<1x128xf32, #tpu.memory_space<vmem>>, %arg4: memref<128x128xbf16, #tpu.memory_space<vmem>>) attributes {dimension_semantics = [#tpu.dimension_semantics<parallel>], iteration_bounds = array<i64: 1>, scalar_prefetch = 0 : i64, scratch_operands = 0 : i64, tpu.core_type = #tpu.core_type<tc>, window_params = [{transform_indices = @transform_0, window_bounds = array<i64: 128, 128>}, {pipeline_mode = #tpu.pipeline_mode<synchronous>, transform_indices = @transform_1, window_bounds = array<i64: 1, 128>}, {pipeline_mode = #tpu.pipeline_mode<synchronous>, transform_indices = @transform_2, window_bounds = array<i64: 1, 128>}, {transform_indices = @transform_3, window_bounds = array<i64: 128, 128>}]} {
    %c0 = arith.constant 0 : index
    %c0_0 = arith.constant 0 : index
    %0 = vector.load %arg1[%c0, %c0_0] : memref<128x128xbf16, #tpu.memory_space<vmem>>, vector<128x128xbf16>
    %1 = arith.extf %0 : vector<128x128xbf16> to vector<128x128xf32>
    %c0_1 = arith.constant 0 : index
    %c0_2 = arith.constant 0 : index
    %2 = vector.load %arg2[%c0_1, %c0_2] : memref<1x128xf32, #tpu.memory_space<vmem>>, vector<1x128xf32>
    %3 = vector.broadcast %2 : vector<1x128xf32> to vector<128x128xf32>
    %4 = arith.mulf %1, %3 : vector<128x128xf32>
    %c0_3 = arith.constant 0 : index
    %c0_4 = arith.constant 0 : index
    %5 = vector.load %arg3[%c0_3, %c0_4] : memref<1x128xf32, #tpu.memory_space<vmem>>, vector<1x128xf32>
    %6 = vector.broadcast %5 : vector<1x128xf32> to vector<128x128xf32>
    %7 = arith.addf %4, %6 : vector<128x128xf32>
    %cst = arith.constant 0.000000e+00 : f32
    %8 = vector.broadcast %cst : f32 to vector<128x128xf32>
    %9 = arith.maximumf %7, %8 : vector<128x128xf32>
    %10 = arith.truncf %9 : vector<128x128xf32> to vector<128x128xbf16>
    %c0_5 = arith.constant 0 : index
    %c0_6 = arith.constant 0 : index
    %11 = vector.load %arg4[%c0_5, %c0_6] : memref<128x128xbf16, #tpu.memory_space<vmem>>, vector<128x128xbf16>
    tpu.vector_store %arg4[%c0_5, %c0_6], %10 {strides = array<i32>} : memref<128x128xbf16, #tpu.memory_space<vmem>>, vector<128x128xbf16>,
    return
  }
  func.func @transform_0(%arg0: i32) -> (i32, i32) {
    %c0_i32 = arith.constant 0 : i32
    %c0_i32_0 = arith.constant 0 : i32
    return %arg0, %c0_i32 : i32, i32
  }
  func.func @transform_1(%arg0: i32) -> (i32, i32) {
    %c0_i32 = arith.constant 0 : i32
    %c0_i32_0 = arith.constant 0 : i32
    %c0_i32_1 = arith.constant 0 : i32
    return %c0_i32, %c0_i32_0 : i32, i32
  }
  func.func @transform_2(%arg0: i32) -> (i32, i32) {
    %c0_i32 = arith.constant 0 : i32
    %c0_i32_0 = arith.constant 0 : i32
    %c0_i32_1 = arith.constant 0 : i32
    return %c0_i32, %c0_i32_0 : i32, i32
  }
  func.func @transform_3(%arg0: i32) -> (i32, i32) {
    %c0_i32 = arith.constant 0 : i32
    %c0_i32_0 = arith.constant 0 : i32
    return %arg0, %c0_i32 : i32, i32
  }
}

module attributes {stable_mosaic.version = 11 : i64} {
  func.func @_conv_stats_kernel(%arg0: i32, %arg1: i32, %arg2: memref<128x128xbf16, #tpu.memory_space<vmem>>, %arg3: memref<128x128xbf16, #tpu.memory_space<vmem>>, %arg4: memref<128x128xbf16, #tpu.memory_space<vmem>>, %arg5: memref<1x1x128xf32, #tpu.memory_space<vmem>>, %arg6: memref<1x1x128xf32, #tpu.memory_space<vmem>>, %arg7: memref<128x128xf32, #tpu.memory_space<vmem>>) attributes {dimension_semantics = [#tpu.dimension_semantics<parallel>, #tpu.dimension_semantics<arbitrary>], iteration_bounds = array<i64: 1, 1>, scalar_prefetch = 0 : i64, scratch_operands = 1 : i64, tpu.core_type = #tpu.core_type<tc>, window_params = [{transform_indices = @transform_0, window_bounds = array<i64: 128, 128>}, {transform_indices = @transform_1, window_bounds = array<i64: 128, 128>}, {transform_indices = @transform_2, window_bounds = array<i64: 128, 128>}, {transform_indices = @transform_3, window_bounds = array<i64: 1, 1, 128>}, {transform_indices = @transform_4, window_bounds = array<i64: 1, 1, 128>}]} {
    %c0_i32 = arith.constant 0 : i32
    %0 = arith.cmpi eq, %arg1, %c0_i32 : i32
    %1 = arith.extui %0 : i1 to i32
    %c0_i32_0 = arith.constant 0 : i32
    %2 = arith.cmpi ne, %1, %c0_i32_0 : i32
    scf.if %2 {
      %cst_10 = arith.constant 0.000000e+00 : f32
      %12 = vector.broadcast %cst_10 : f32 to vector<128x128xf32>
      %c0_11 = arith.constant 0 : index
      %c0_12 = arith.constant 0 : index
      %13 = vector.load %arg7[%c0_11, %c0_12] : memref<128x128xf32, #tpu.memory_space<vmem>>, vector<128x128xf32>
      tpu.vector_store %arg7[%c0_11, %c0_12], %12 {strides = array<i32>} : memref<128x128xf32, #tpu.memory_space<vmem>>, vector<128x128xf32>,
    } else {
    }
    %c0 = arith.constant 0 : index
    %c0_1 = arith.constant 0 : index
    %3 = vector.load %arg7[%c0, %c0_1] : memref<128x128xf32, #tpu.memory_space<vmem>>, vector<128x128xf32>
    %c0_2 = arith.constant 0 : index
    %c0_3 = arith.constant 0 : index
    %4 = vector.load %arg2[%c0_2, %c0_3] : memref<128x128xbf16, #tpu.memory_space<vmem>>, vector<128x128xbf16>
    %c0_4 = arith.constant 0 : index
    %c0_5 = arith.constant 0 : index
    %5 = vector.load %arg3[%c0_4, %c0_5] : memref<128x128xbf16, #tpu.memory_space<vmem>>, vector<128x128xbf16>
    %cst = arith.constant dense<0.000000e+00> : vector<128x128xf32>
    %6 = tpu.matmul %4, %5, %cst {dimension_numbers = #tpu.dot_dimension_numbers<[1], [0], [0], [1], [0, 0, 1, 1], [], []>} : vector<128x128xbf16>, vector<128x128xbf16>, vector<128x128xf32> -> vector<128x128xf32>
    %7 = arith.addf %3, %6 : vector<128x128xf32>
    %c0_6 = arith.constant 0 : index
    %c0_7 = arith.constant 0 : index
    %8 = vector.load %arg7[%c0_6, %c0_7] : memref<128x128xf32, #tpu.memory_space<vmem>>, vector<128x128xf32>
    tpu.vector_store %arg7[%c0_6, %c0_7], %7 {strides = array<i32>} : memref<128x128xf32, #tpu.memory_space<vmem>>, vector<128x128xf32>,
    %c0_i32_8 = arith.constant 0 : i32
    %9 = arith.cmpi eq, %arg1, %c0_i32_8 : i32
    %10 = arith.extui %9 : i1 to i32
    %c0_i32_9 = arith.constant 0 : i32
    %11 = arith.cmpi ne, %10, %c0_i32_9 : i32
    scf.if %11 {
      %c0_10 = arith.constant 0 : index
      %c0_11 = arith.constant 0 : index
      %12 = vector.load %arg7[%c0_10, %c0_11] : memref<128x128xf32, #tpu.memory_space<vmem>>, vector<128x128xf32>
      %13 = arith.truncf %12 : vector<128x128xf32> to vector<128x128xbf16>
      %c0_12 = arith.constant 0 : index
      %c0_13 = arith.constant 0 : index
      %14 = vector.load %arg4[%c0_12, %c0_13] : memref<128x128xbf16, #tpu.memory_space<vmem>>, vector<128x128xbf16>
      tpu.vector_store %arg4[%c0_12, %c0_13], %13 {strides = array<i32>} : memref<128x128xbf16, #tpu.memory_space<vmem>>, vector<128x128xbf16>,
      %cst_14 = arith.constant dense<0.000000e+00> : vector<128xf32>
      %15 = vector.multi_reduction <add>, %12, %cst_14 [0] : vector<128x128xf32> to vector<128xf32>
      %16 = vector.shape_cast %15 : vector<128xf32> to vector<1x128xf32>
      %c0_15 = arith.constant 0 : index
      %c0_16 = arith.constant 0 : index
      %c0_17 = arith.constant 0 : index
      %17 = vector.load %arg5[%c0_15, %c0_16, %c0_17] : memref<1x1x128xf32, #tpu.memory_space<vmem>>, vector<1x1x128xf32>
      %18 = vector.shape_cast %17 : vector<1x1x128xf32> to vector<1x128xf32>
      %19 = vector.shape_cast %16 : vector<1x128xf32> to vector<1x1x128xf32>
      tpu.vector_store %arg5[%c0_15, %c0_16, %c0_17], %19 {strides = array<i32>} : memref<1x1x128xf32, #tpu.memory_space<vmem>>, vector<1x1x128xf32>,
      %20 = arith.mulf %12, %12 : vector<128x128xf32>
      %cst_18 = arith.constant dense<0.000000e+00> : vector<128xf32>
      %21 = vector.multi_reduction <add>, %20, %cst_18 [0] : vector<128x128xf32> to vector<128xf32>
      %22 = vector.shape_cast %21 : vector<128xf32> to vector<1x128xf32>
      %c0_19 = arith.constant 0 : index
      %c0_20 = arith.constant 0 : index
      %c0_21 = arith.constant 0 : index
      %23 = vector.load %arg6[%c0_19, %c0_20, %c0_21] : memref<1x1x128xf32, #tpu.memory_space<vmem>>, vector<1x1x128xf32>
      %24 = vector.shape_cast %23 : vector<1x1x128xf32> to vector<1x128xf32>
      %25 = vector.shape_cast %22 : vector<1x128xf32> to vector<1x1x128xf32>
      tpu.vector_store %arg6[%c0_19, %c0_20, %c0_21], %25 {strides = array<i32>} : memref<1x1x128xf32, #tpu.memory_space<vmem>>, vector<1x1x128xf32>,
    } else {
    }
    return
  }
  func.func @transform_0(%arg0: i32, %arg1: i32) -> (i32, i32) {
    %c0_i32 = arith.constant 0 : i32
    return %arg0, %arg1 : i32, i32
  }
  func.func @transform_1(%arg0: i32, %arg1: i32) -> (i32, i32) {
    %c0_i32 = arith.constant 0 : i32
    %c0_i32_0 = arith.constant 0 : i32
    return %arg1, %c0_i32 : i32, i32
  }
  func.func @transform_2(%arg0: i32, %arg1: i32) -> (i32, i32) {
    %c0_i32 = arith.constant 0 : i32
    %c0_i32_0 = arith.constant 0 : i32
    return %arg0, %c0_i32 : i32, i32
  }
  func.func @transform_3(%arg0: i32, %arg1: i32) -> (i32, i32, i32) {
    %c0_i32 = arith.constant 0 : i32
    %c0_i32_0 = arith.constant 0 : i32
    %c0_i32_1 = arith.constant 0 : i32
    return %arg0, %c0_i32, %c0_i32_0 : i32, i32, i32
  }
  func.func @transform_4(%arg0: i32, %arg1: i32) -> (i32, i32, i32) {
    %c0_i32 = arith.constant 0 : i32
    %c0_i32_0 = arith.constant 0 : i32
    %c0_i32_1 = arith.constant 0 : i32
    return %arg0, %c0_i32, %c0_i32_0 : i32, i32, i32
  }
}

module attributes {stable_mosaic.version = 11 : i64} {
  func.func @_bn_relu_add_kernel(%arg0: i32, %arg1: memref<128x128xbf16, #tpu.memory_space<vmem>>, %arg2: memref<1x128xf32, #tpu.memory_space<vmem>>, %arg3: memref<1x128xf32, #tpu.memory_space<vmem>>, %arg4: memref<128x128xbf16, #tpu.memory_space<vmem>>, %arg5: memref<128x128xf32, #tpu.memory_space<vmem>>) attributes {dimension_semantics = [#tpu.dimension_semantics<parallel>], iteration_bounds = array<i64: 1>, scalar_prefetch = 0 : i64, scratch_operands = 0 : i64, tpu.core_type = #tpu.core_type<tc>, window_params = [{transform_indices = @transform_0, window_bounds = array<i64: 128, 128>}, {pipeline_mode = #tpu.pipeline_mode<synchronous>, transform_indices = @transform_1, window_bounds = array<i64: 1, 128>}, {pipeline_mode = #tpu.pipeline_mode<synchronous>, transform_indices = @transform_2, window_bounds = array<i64: 1, 128>}, {transform_indices = @transform_3, window_bounds = array<i64: 128, 128>}, {transform_indices = @transform_4, window_bounds = array<i64: 128, 128>}]} {
    %c0 = arith.constant 0 : index
    %c0_0 = arith.constant 0 : index
    %0 = vector.load %arg1[%c0, %c0_0] : memref<128x128xbf16, #tpu.memory_space<vmem>>, vector<128x128xbf16>
    %1 = arith.extf %0 : vector<128x128xbf16> to vector<128x128xf32>
    %c0_1 = arith.constant 0 : index
    %c0_2 = arith.constant 0 : index
    %2 = vector.load %arg2[%c0_1, %c0_2] : memref<1x128xf32, #tpu.memory_space<vmem>>, vector<1x128xf32>
    %3 = vector.broadcast %2 : vector<1x128xf32> to vector<128x128xf32>
    %4 = arith.mulf %1, %3 : vector<128x128xf32>
    %c0_3 = arith.constant 0 : index
    %c0_4 = arith.constant 0 : index
    %5 = vector.load %arg3[%c0_3, %c0_4] : memref<1x128xf32, #tpu.memory_space<vmem>>, vector<1x128xf32>
    %6 = vector.broadcast %5 : vector<1x128xf32> to vector<128x128xf32>
    %7 = arith.addf %4, %6 : vector<128x128xf32>
    %cst = arith.constant 0.000000e+00 : f32
    %8 = vector.broadcast %cst : f32 to vector<128x128xf32>
    %9 = arith.maximumf %7, %8 : vector<128x128xf32>
    %c0_5 = arith.constant 0 : index
    %c0_6 = arith.constant 0 : index
    %10 = vector.load %arg4[%c0_5, %c0_6] : memref<128x128xbf16, #tpu.memory_space<vmem>>, vector<128x128xbf16>
    %11 = arith.extf %10 : vector<128x128xbf16> to vector<128x128xf32>
    %12 = arith.addf %9, %11 : vector<128x128xf32>
    %c0_7 = arith.constant 0 : index
    %c0_8 = arith.constant 0 : index
    %13 = vector.load %arg5[%c0_7, %c0_8] : memref<128x128xf32, #tpu.memory_space<vmem>>, vector<128x128xf32>
    tpu.vector_store %arg5[%c0_7, %c0_8], %12 {strides = array<i32>} : memref<128x128xf32, #tpu.memory_space<vmem>>, vector<128x128xf32>,
    return
  }
  func.func @transform_0(%arg0: i32) -> (i32, i32) {
    %c0_i32 = arith.constant 0 : i32
    %c0_i32_0 = arith.constant 0 : i32
    return %arg0, %c0_i32 : i32, i32
  }
  func.func @transform_1(%arg0: i32) -> (i32, i32) {
    %c0_i32 = arith.constant 0 : i32
    %c0_i32_0 = arith.constant 0 : i32
    %c0_i32_1 = arith.constant 0 : i32
    return %c0_i32, %c0_i32_0 : i32, i32
  }
  func.func @transform_2(%arg0: i32) -> (i32, i32) {
    %c0_i32 = arith.constant 0 : i32
    %c0_i32_0 = arith.constant 0 : i32
    %c0_i32_1 = arith.constant 0 : i32
    return %c0_i32, %c0_i32_0 : i32, i32
  }
  func.func @transform_3(%arg0: i32) -> (i32, i32) {
    %c0_i32 = arith.constant 0 : i32
    %c0_i32_0 = arith.constant 0 : i32
    return %arg0, %c0_i32 : i32, i32
  }
  func.func @transform_4(%arg0: i32) -> (i32, i32) {
    %c0_i32 = arith.constant 0 : i32
    %c0_i32_0 = arith.constant 0 : i32
    return %arg0, %c0_i32 : i32, i32
  }
}

</mosaic_0001>

<bundles_post_ra>
// kernel: resnet_block_forward.5
= control target key start
LH: loop header
LB: loop body
LE: loop exit
PB: predicated region body
PF: predicated region fallthrough
CT: control target
= control target key end

     0   :  { %s336_s0 = inlined_call_operand.vmem [shape: bf16[128,128], index: 0, kind: input, shape index: {}]   ;;  %s337_s1 = inlined_call_operand.vmem [shape: f32[1,128], index: 1, kind: input, shape index: {}]   ;;  %s338_s2 = inlined_call_operand.vmem [shape: f32[1,128], index: 2, kind: input, shape index: {}]   ;;  %s339_s3 = inlined_call_operand.vmem [shape: bf16[128,128], index: 3, kind: output, shape index: {}]  }
   0x1   :  { %v139_v0 = vld [vmem:[%s336_s0] sm:$0xff]   ;;  %v210_v5 = vld [vmem:[%s336_s0 + $0x8] sm:$0xff]   ;;  %v211_v8 = vld [vmem:[%s336_s0 + $0x10] sm:$0xff]  }
   0x2   :  { %v252_v1 = vld [vmem:[%s337_s1] ss:$0 sm:$0xff]  ;;  %v140_v2 = vunpack.c.l.bf16 %v139_v0  ;;  %v141_v3 = vunpack.c.h.bf16 %v139_v0  ;;  %v144_v6 = vunpack.c.l.bf16 %v210_v5  ;;  %v145_v7 = vunpack.c.h.bf16 %v210_v5  ;;  %v212_v9 = vld [vmem:[%s336_s0 + $0x18] sm:$0xff]   ;;  %v214_v35 = vld [vmem:[%s336_s0 + $0x28] sm:$0xff]  }
   0x3   :  { %v257_v4 = vld [vmem:[%s338_s2] ss:$0 sm:$0xff]  ;;  %v148_v12 = vunpack.c.l.bf16 %v211_v8  ;;  %v149_v13 = vunpack.c.h.bf16 %v211_v8  ;;  %v152_v16 = vunpack.c.l.bf16 %v212_v9  ;;  %v153_v17 = vunpack.c.h.bf16 %v212_v9  ;;  %v215_v40 = vld [vmem:[%s336_s0 + $0x30] sm:$0xff]   ;;  %v216_v45 = vld [vmem:[%s336_s0 + $0x38] sm:$0xff]  }
   0x4   :  { %v50_v10 = vmul.f32 %v252_v1, %v140_v2  ;;  %v51_v11 = vmul.f32 %v252_v1, %v141_v3  ;;  %v52_v14 = vmul.f32 %v252_v1, %v144_v6  ;;  %v53_v15 = vmul.f32 %v252_v1, %v145_v7  ;;  %v213_v26 = vld [vmem:[%s336_s0 + $0x20] sm:$0xff]  }
   0x5   :  { %v54_v20 = vmul.f32 %v252_v1, %v148_v12  ;;  %v55_v21 = vmul.f32 %v252_v1, %v149_v13  ;;  %v56_v24 = vmul.f32 %v252_v1, %v152_v16  ;;  %v57_v25 = vmul.f32 %v252_v1, %v153_v17 }
   0x6   :  { %v70_v18 = vadd.f32 %v257_v4, %v50_v10  ;;  %v71_v19 = vadd.f32 %v257_v4, %v51_v11  ;;  %v72_v22 = vadd.f32 %v257_v4, %v52_v14  ;;  %v73_v23 = vadd.f32 %v257_v4, %v53_v15 }
   0x7   :  { %v74_v29 = vadd.f32 %v257_v4, %v54_v20  ;;  %v75_v30 = vadd.f32 %v257_v4, %v55_v21  ;;  %v76_v33 = vadd.f32 %v257_v4, %v56_v24  ;;  %v77_v34 = vadd.f32 %v257_v4, %v57_v25 }
   0x8   :  { %v86_v27 = vmax.f32 %v70_v18, 0.0  ;;  %v87_v28 = vmax.f32 %v71_v19, 0.0  ;;  %v88_v31 = vmax.f32 %v72_v22, 0.0  ;;  %v89_v32 = vmax.f32 %v73_v23, 0.0 }
   0x9   :  { %v90_v37 = vmax.f32 %v74_v29, 0.0  ;;  %v91_v38 = vmax.f32 %v75_v30, 0.0  ;;  %v156_v39 = vunpack.c.l.bf16 %v213_v26  ;;  %v92_v42 = vmax.f32 %v76_v33, 0.0 }
   0xa   :  { %v173_v36 = vpack.c.bf16 %v87_v28, %v86_v27  ;;  %v178_v41 = vpack.c.bf16 %v89_v32, %v88_v31  ;;  %v93_v43 = vmax.f32 %v77_v34, 0.0  ;;  %v157_v44 = vunpack.c.h.bf16 %v213_v26 }
   0xb   :  { %v183_v46 = vpack.c.bf16 %v91_v38, %v90_v37  ;;  %v58_v47 = vmul.f32 %v252_v1, %v156_v39  ;;  %v160_v48 = vunpack.c.l.bf16 %v214_v35  ;;  %v161_v49 = vunpack.c.h.bf16 %v214_v35 }
   0xc   :  { %174 = vst [vmem:[%s339_s3] sm:$0xff] %v173_v36   ;;  %v188_v50 = vpack.c.bf16 %v93_v43, %v92_v42  ;;  %v59_v51 = vmul.f32 %v252_v1, %v157_v44  ;;  %v164_v52 = vunpack.c.l.bf16 %v215_v40  ;;  %v165_v53 = vunpack.c.h.bf16 %v215_v40 }
   0xd   :  { %217 = vst [vmem:[%s339_s3 + $0x8] sm:$0xff] %v178_v41   ;;  %v78_v54 = vadd.f32 %v257_v4, %v58_v47  ;;  %v60_v55 = vmul.f32 %v252_v1, %v160_v48  ;;  %v61_v56 = vmul.f32 %v252_v1, %v161_v49  ;;  %v168_v57 = vunpack.c.l.bf16 %v216_v45 }
   0xe   :  { %218 = vst [vmem:[%s339_s3 + $0x10] sm:$0xff] %v183_v46   ;;  %v79_v58 = vadd.f32 %v257_v4, %v59_v51  ;;  %v62_v59 = vmul.f32 %v252_v1, %v164_v52  ;;  %v63_v60 = vmul.f32 %v252_v1, %v165_v53  ;;  %v169_v61 = vunpack.c.h.bf16 %v216_v45 }
   0xf   :  { %219 = vst [vmem:[%s339_s3 + $0x18] sm:$0xff] %v188_v50   ;;  %v94_v62 = vmax.f32 %v78_v54, 0.0  ;;  %v80_v63 = vadd.f32 %v257_v4, %v60_v55  ;;  %v81_v0 = vadd.f32 %v257_v4, %v61_v56  ;;  %v64_v2 = vmul.f32 %v252_v1, %v168_v57 }
  0x10   :  { %v95_v3 = vmax.f32 %v79_v58, 0.0  ;;  %v82_v5 = vadd.f32 %v257_v4, %v62_v59  ;;  %v83_v6 = vadd.f32 %v257_v4, %v63_v60  ;;  %v65_v7 = vmul.f32 %v252_v1, %v169_v61 }
  0x11   :  { %v96_v8 = vmax.f32 %v80_v63, 0.0  ;;  %v97_v9 = vmax.f32 %v81_v0, 0.0  ;;  %v84_v10 = vadd.f32 %v257_v4, %v64_v2 }
  0x12   :  { %v193_v11 = vpack.c.bf16 %v95_v3, %v94_v62  ;;  %v98_v12 = vmax.f32 %v82_v5, 0.0  ;;  %v99_v13 = vmax.f32 %v83_v6, 0.0  ;;  %v85_v14 = vadd.f32 %v257_v4, %v65_v7 }
  0x13   :  { %v198_v15 = vpack.c.bf16 %v97_v9, %v96_v8  ;;  %v100_v16 = vmax.f32 %v84_v10, 0.0 }
  0x14   :  { %220 = vst [vmem:[%s339_s3 + $0x20] sm:$0xff] %v193_v11   ;;  %v203_v17 = vpack.c.bf16 %v99_v13, %v98_v12  ;;  %v101_v18 = vmax.f32 %v85_v14, 0.0 }
  0x15   :  { %221 = vst [vmem:[%s339_s3 + $0x28] sm:$0xff] %v198_v15  }
  0x16   :  { %222 = vst [vmem:[%s339_s3 + $0x30] sm:$0xff] %v203_v17   ;;  %v208_v1 = vpack.c.bf16 %v101_v18, %v100_v16 }
  0x18   :  { %223 = vst [vmem:[%s339_s3 + $0x38] sm:$0xff] %v208_v1  }

// kernel: resnet_block_forward.4
= control target key start
LH: loop header
LB: loop body
LE: loop exit
PB: predicated region body
PF: predicated region fallthrough
CT: control target
= control target key end

     0   :  { %s642_s1 = inlined_call_operand.vmem [shape: bf16[128,128], index: 1, kind: input, shape index: {}]   ;;  %s643_s0 = inlined_call_operand.vmem [shape: bf16[128,128], index: 0, kind: input, shape index: {}]   ;;  %s644_s2 = inlined_call_operand.vmem [shape: bf16[128,128], index: 2, kind: output, shape index: {0}]   ;;  %s645_s3 = inlined_call_operand.vmem [shape: f32[1,1,128], index: 3, kind: output, shape index: {1}]   ;;  %s646_s4 = inlined_call_operand.vmem [shape: f32[1,1,128], index: 4, kind: output, shape index: {2}]  }
   0x1   :  { %v461_v0 = vld [vmem:[%s642_s1 + $0x38] sm:$0xff]  ;;  %v460_v1 = vld [vmem:[%s642_s1 + $0x30] sm:$0xff]  ;;  %v459_v2 = vld [vmem:[%s642_s1 + $0x28] sm:$0xff] }
   0x2   :  { %178 = vmatpush.bf16.msra.mxu0 %v461_v0  ;;  %509 = vmatpush.bf16.msra.mxu1 %v461_v0  ;;  %v458_v3 = vld [vmem:[%s642_s1 + $0x20] sm:$0xff]  ;;  %v457_v4 = vld [vmem:[%s642_s1 + $0x18] sm:$0xff]  ;;  %v456_v5 = vld [vmem:[%s642_s1 + $0x10] sm:$0xff] }
   0x3   :  { %510 = vmatpush.bf16.msra.mxu2 %v461_v0  ;;  %511 = vmatpush.bf16.msra.mxu3 %v461_v0  ;;  %v455_v6 = vld [vmem:[%s642_s1 + $0x8] sm:$0xff]  ;;  %v454_v7 = vld [vmem:[%s642_s1] sm:$0xff]  ;;  %v448_v9 = vld [vmem:[%s643_s0 + $0x10] sm:$0xff] }
   0x4   :  { %v446_v8 = vld [vmem:[%s643_s0] sm:$0xff]  ;;  %v452_v11 = vld [vmem:[%s643_s0 + $0x30] sm:$0xff]  ;;  %v447_v12 = vld [vmem:[%s643_s0 + $0x8] sm:$0xff] }
   0x5   :  { %v450_v10 = vld [vmem:[%s643_s0 + $0x20] sm:$0xff]  ;;  %v449_v13 = vld [vmem:[%s643_s0 + $0x18] sm:$0xff]  ;;  %v451_v14 = vld [vmem:[%s643_s0 + $0x28] sm:$0xff] }
   0x6   :  { %179 = vmatpush.bf16.msra.mxu0 %v460_v1  ;;  %512 = vmatpush.bf16.msra.mxu1 %v460_v1  ;;  %v453_v15 = vld [vmem:[%s643_s0 + $0x38] sm:$0xff] }
   0x7   :  { %513 = vmatpush.bf16.msra.mxu2 %v460_v1  ;;  %514 = vmatpush.bf16.msra.mxu3 %v460_v1 }
   0xa   :  { %180 = vmatpush.bf16.msra.mxu0 %v459_v2  ;;  %515 = vmatpush.bf16.msra.mxu1 %v459_v2 }
   0xb   :  { %516 = vmatpush.bf16.msra.mxu2 %v459_v2  ;;  %517 = vmatpush.bf16.msra.mxu3 %v459_v2 }
   0xe   :  { %181 = vmatpush.bf16.msra.mxu0 %v458_v3  ;;  %518 = vmatpush.bf16.msra.mxu1 %v458_v3 }
   0xf   :  { %519 = vmatpush.bf16.msra.mxu2 %v458_v3  ;;  %520 = vmatpush.bf16.msra.mxu3 %v458_v3 }
  0x12   :  { %182 = vmatpush.bf16.msra.mxu0 %v457_v4  ;;  %521 = vmatpush.bf16.msra.mxu1 %v457_v4 }
  0x13   :  { %522 = vmatpush.bf16.msra.mxu2 %v457_v4  ;;  %523 = vmatpush.bf16.msra.mxu3 %v457_v4 }
  0x16   :  { %183 = vmatpush.bf16.msra.mxu0 %v456_v5  ;;  %524 = vmatpush.bf16.msra.mxu1 %v456_v5 }
  0x17   :  { %525 = vmatpush.bf16.msra.mxu2 %v456_v5  ;;  %526 = vmatpush.bf16.msra.mxu3 %v456_v5 }
  0x1a   :  { %184 = vmatpush.bf16.msra.mxu0 %v455_v6  ;;  %527 = vmatpush.bf16.msra.mxu1 %v455_v6 }
  0x1b   :  { %528 = vmatpush.bf16.msra.mxu2 %v455_v6  ;;  %529 = vmatpush.bf16.msra.mxu3 %v455_v6 }
  0x1e   :  { %185 = vmatpush.bf16.msra.mxu0 %v454_v7  ;;  %530 = vmatpush.bf16.msra.mxu1 %v454_v7 }
  0x1f   :  { %531 = vmatpush.bf16.msra.mxu2 %v454_v7  ;;  %532 = vmatpush.bf16.msra.mxu3 %v454_v7 }
  0x21   :  { %186 = vmatmul.bf16.vlgmr.msra.gmra.mxu0 %v446_v8  ;;  %196 = vmatmul.bf16.vlgmr.msra.gmra.mxu1 %v448_v9 }
  0x22   :  { %206 = vmatmul.bf16.vlgmr.msra.gmra.mxu2 %v450_v10  ;;  %216 = vmatmul.bf16.vlgmr.msra.gmra.mxu3 %v452_v11 }
  0x31   :  { %191 = vmatmul.bf16.gmra.mxu0 %v447_v12  ;;  %201 = vmatmul.bf16.gmra.mxu1 %v449_v13 }
  0x32   :  { %211 = vmatmul.bf16.gmra.mxu2 %v451_v14  ;;  %221 = vmatmul.bf16.gmra.mxu3 %v453_v15 }
  0x9e   :  { %v187_v16 = vpop.f32.mrf.mxu0  ;;  %v197_v17 = vpop.f32.mrf.mxu1 }
  0x9f   :  { %v332_v31 = vmul.f32 %v187_v16, %v187_v16  ;;  %v336_v45 = vmul.f32 %v197_v17, %v197_v17 }
  0xa5   :  { %v207_v18 = vpop.f32.mrf.mxu2  ;;  %v606_v19 = vpop.f32.mrf.mxu3 }
  0xa6   :  { %v189_v20 = vpop.f32.mrf.mxu0  ;;  %v199_v21 = vpop.f32.mrf.mxu1  ;;  %v340_v61 = vmul.f32 %v207_v18, %v207_v18  ;;  %v344_v9 = vmul.f32 %v606_v19, %v606_v19 }
  0xa7   :  { %v465_v22 = vpack.c.bf16 %v189_v20, %v187_v16  ;;  %v475_v23 = vpack.c.bf16 %v199_v21, %v197_v17  ;;  %v333_v30 = vmul.f32 %v189_v20, %v189_v20  ;;  %v310_v33 = vadd.f32 %v189_v20, %v187_v16 }
  0xa8   :  { %v337_v48 = vmul.f32 %v199_v21, %v199_v21 }
  0xa9   :  { %466 = vst [vmem:[%s644_s2] sm:$0xff] %v465_v22   ;;  %v348_v34 = vadd.f32 %v333_v30, %v332_v31 }
  0xaa   :  { %503 = vst [vmem:[%s644_s2 + $0x10] sm:$0xff] %v475_v23  }
  0xad   :  { %v209_v24 = vpop.f32.mrf.mxu2  ;;  %v219_v25 = vpop.f32.mrf.mxu3 }
  0xae   :  { %v192_v26 = vpop.f32.mrf.mxu0  ;;  %v202_v27 = vpop.f32.mrf.mxu1  ;;  %v485_v28 = vpack.c.bf16 %v209_v24, %v207_v18  ;;  %v495_v29 = vpack.c.bf16 %v219_v25, %v606_v19  ;;  %v341_v0 = vmul.f32 %v209_v24, %v209_v24  ;;  %v345_v12 = vmul.f32 %v219_v25, %v219_v25 }
  0xaf   :  { %v334_v32 = vmul.f32 %v192_v26, %v192_v26  ;;  %v311_v35 = vadd.f32 %v310_v33, %v192_v26  ;;  %v338_v51 = vmul.f32 %v202_v27, %v202_v27 }
  0xb0   :  { %505 = vst [vmem:[%s644_s2 + $0x20] sm:$0xff] %v485_v28  }
  0xb1   :  { %507 = vst [vmem:[%s644_s2 + $0x30] sm:$0xff] %v495_v29   ;;  %v349_v38 = vadd.f32 %v348_v34, %v334_v32 }
  0xb5   :  { %v212_v36 = vpop.f32.mrf.mxu2  ;;  %v222_v37 = vpop.f32.mrf.mxu3 }
  0xb6   :  { %v194_v39 = vpop.f32.mrf.mxu0  ;;  %v204_v40 = vpop.f32.mrf.mxu1  ;;  %v342_v4 = vmul.f32 %v212_v36, %v212_v36  ;;  %v346_v16 = vmul.f32 %v222_v37, %v222_v37 }
  0xb7   :  { %v470_v41 = vpack.c.bf16 %v194_v39, %v192_v26  ;;  %v312_v42 = vadd.f32 %v311_v35, %v194_v39  ;;  %v335_v43 = vmul.f32 %v194_v39, %v194_v39  ;;  %v480_v44 = vpack.c.bf16 %v204_v40, %v202_v27 }
  0xb8   :  { %v339_v59 = vmul.f32 %v204_v40, %v204_v40 }
  0xb9   :  { %502 = vst [vmem:[%s644_s2 + $0x8] sm:$0xff] %v470_v41   ;;  %v313_v46 = vadd.f32 %v312_v42, %v197_v17  ;;  %v350_v47 = vadd.f32 %v349_v38, %v335_v43 }
  0xba   :  { %504 = vst [vmem:[%s644_s2 + $0x18] sm:$0xff] %v480_v44  }
  0xbb   :  { %v351_v49 = vadd.f32 %v350_v47, %v336_v45  ;;  %v314_v50 = vadd.f32 %v313_v46, %v199_v21 }
  0xbd   :  { %v315_v52 = vadd.f32 %v314_v50, %v202_v27  ;;  %v352_v53 = vadd.f32 %v351_v49, %v337_v48  ;;  %v214_v54 = vpop.f32.mrf.mxu2  ;;  %v224_v55 = vpop.f32.mrf.mxu3 }
  0xbe   :  { %v490_v56 = vpack.c.bf16 %v214_v54, %v212_v36  ;;  %v500_v57 = vpack.c.bf16 %v224_v55, %v222_v37  ;;  %v343_v8 = vmul.f32 %v214_v54, %v214_v54  ;;  %v347_v21 = vmul.f32 %v224_v55, %v224_v55 }
  0xbf   :  { %v316_v58 = vadd.f32 %v315_v52, %v204_v40  ;;  %v353_v60 = vadd.f32 %v352_v53, %v338_v51 }
  0xc0   :  { %506 = vst [vmem:[%s644_s2 + $0x28] sm:$0xff] %v490_v56  }
  0xc1   :  { %v317_v62 = vadd.f32 %v316_v58, %v207_v18  ;;  %v354_v63 = vadd.f32 %v353_v60, %v339_v59  ;;  %508 = vst [vmem:[%s644_s2 + $0x38] sm:$0xff] %v500_v57  }
  0xc3   :  { %v355_v1 = vadd.f32 %v354_v63, %v340_v61  ;;  %v318_v2 = vadd.f32 %v317_v62, %v209_v24 }
  0xc5   :  { %v319_v3 = vadd.f32 %v318_v2, %v212_v36  ;;  %v356_v5 = vadd.f32 %v355_v1, %v341_v0 }
  0xc7   :  { %v357_v6 = vadd.f32 %v356_v5, %v342_v4  ;;  %v320_v7 = vadd.f32 %v319_v3, %v214_v54 }
  0xc9   :  { %v321_v10 = vadd.f32 %v320_v7, %v606_v19  ;;  %v358_v11 = vadd.f32 %v357_v6, %v343_v8 }
  0xcb   :  { %v359_v13 = vadd.f32 %v358_v11, %v344_v9  ;;  %v322_v14 = vadd.f32 %v321_v10, %v219_v25 }
  0xcd   :  { %v323_v15 = vadd.f32 %v322_v14, %v222_v37  ;;  %v360_v17 = vadd.f32 %v359_v13, %v345_v12 }
  0xcf   :  { %v361_v18 = vadd.f32 %v360_v17, %v346_v16  ;;  %v324_v20 = vadd.f32 %v323_v15, %v224_v55 }
  0xd1   :  { %v325_v22 = vrot.slane %v324_v20, 4  ;;  %v362_v23 = vadd.f32 %v361_v18, %v347_v21 }
  0xd3   :  { %v326_v24 = vadd.f32 %v325_v22, %v324_v20  ;;  %v363_v26 = vrot.slane %v362_v23, 4 }
  0xd5   :  { %v327_v27 = vrot.slane %v326_v24, 2  ;;  %v364_v28 = vadd.f32 %v363_v26, %v362_v23 }
  0xd7   :  { %v328_v29 = vadd.f32 %v327_v27, %v326_v24  ;;  %v365_v30 = vrot.slane %v364_v28, 2 }
  0xd9   :  { %v329_v31 = vrot.slane %v328_v29, 1  ;;  %v366_v19 = vadd.f32 %v365_v30, %v364_v28 }
  0xdb   :  { %v330_v32 = vadd.f32 %v329_v31, %v328_v29  ;;  %v367_v33 = vrot.slane %v366_v19, 1 }
  0xdd   :  { %331 = vst [vmem:[%s645_s3] sm:$0x1] %v330_v32  ;;  %v368_v25 = vadd.f32 %v367_v33, %v366_v19 }
  0xdf   :  { %369 = vst [vmem:[%s646_s4] sm:$0x1] %v368_v25 }

// kernel: resnet_block_forward.7
= control target key start
LH: loop header
LB: loop body
LE: loop exit
PB: predicated region body
PF: predicated region fallthrough
CT: control target
= control target key end

     0   :  { %s420_s0 = inlined_call_operand.vmem [shape: bf16[128,128], index: 0, kind: input, shape index: {}]   ;;  %s421_s1 = inlined_call_operand.vmem [shape: f32[1,128], index: 1, kind: input, shape index: {}]   ;;  %s422_s2 = inlined_call_operand.vmem [shape: f32[1,128], index: 2, kind: input, shape index: {}]   ;;  %s423_s3 = inlined_call_operand.vmem [shape: bf16[128,128], index: 3, kind: input, shape index: {}]   ;;  %s424_s4 = inlined_call_operand.vmem [shape: f32[128,128], index: 4, kind: output, shape index: {}]  }
   0x1   :  { %v174_v0 = vld [vmem:[%s420_s0] sm:$0xff]   ;;  %v237_v8 = vld [vmem:[%s420_s0 + $0x8] sm:$0xff]   ;;  %v238_v10 = vld [vmem:[%s420_s0 + $0x10] sm:$0xff]  }
   0x2   :  { %v284_v1 = vld [vmem:[%s421_s1] ss:$0 sm:$0xff]  ;;  %v175_v2 = vunpack.c.l.bf16 %v174_v0  ;;  %v176_v5 = vunpack.c.h.bf16 %v174_v0  ;;  %v244_v9 = vld [vmem:[%s423_s3 + $0x8] sm:$0xff]   ;;  %v179_v13 = vunpack.c.l.bf16 %v237_v8  ;;  %v245_v15 = vld [vmem:[%s423_s3 + $0x10] sm:$0xff]   ;;  %v180_v17 = vunpack.c.h.bf16 %v237_v8 }
   0x3   :  { %v289_v3 = vld [vmem:[%s422_s2] ss:$0 sm:$0xff]  ;;  %v211_v14 = vunpack.c.l.bf16 %v244_v9  ;;  %v239_v16 = vld [vmem:[%s420_s0 + $0x18] sm:$0xff]   ;;  %v212_v18 = vunpack.c.h.bf16 %v244_v9  ;;  %v183_v19 = vunpack.c.l.bf16 %v238_v10  ;;  %v215_v20 = vunpack.c.l.bf16 %v245_v15  ;;  %v241_v51 = vld [vmem:[%s420_s0 + $0x28] sm:$0xff]  }
   0x4   :  { %v206_v4 = vld [vmem:[%s423_s3] sm:$0xff]   ;;  %v53_v11 = vmul.f32 %v284_v1, %v175_v2  ;;  %v54_v12 = vmul.f32 %v284_v1, %v176_v5  ;;  %v55_v23 = vmul.f32 %v284_v1, %v179_v13  ;;  %v184_v24 = vunpack.c.h.bf16 %v238_v10  ;;  %v317_v25 = vld [vmem:[%s423_s3 + $0x18] sm:$0xff]   ;;  %v248_v60 = vld [vmem:[%s423_s3 + $0x28] sm:$0xff]  }
   0x5   :  { %v207_v6 = vunpack.c.l.bf16 %v206_v4  ;;  %v208_v7 = vunpack.c.h.bf16 %v206_v4  ;;  %v56_v26 = vmul.f32 %v284_v1, %v180_v17  ;;  %v57_v27 = vmul.f32 %v284_v1, %v183_v19  ;;  %v240_v38 = vld [vmem:[%s420_s0 + $0x20] sm:$0xff]   ;;  %v242_v61 = vld [vmem:[%s420_s0 + $0x30] sm:$0xff]   ;;  %v243_v17 = vld [vmem:[%s420_s0 + $0x38] sm:$0xff]  }
   0x6   :  { %v73_v21 = vadd.f32 %v289_v3, %v53_v11  ;;  %v74_v22 = vadd.f32 %v289_v3, %v54_v12  ;;  %v216_v28 = vunpack.c.h.bf16 %v245_v15  ;;  %v187_v29 = vunpack.c.l.bf16 %v239_v16  ;;  %v247_v50 = vld [vmem:[%s423_s3 + $0x20] sm:$0xff]   ;;  %v249_v12 = vld [vmem:[%s423_s3 + $0x30] sm:$0xff]  }
   0x7   :  { %v75_v32 = vadd.f32 %v289_v3, %v55_v23  ;;  %v58_v33 = vmul.f32 %v284_v1, %v184_v24  ;;  %v76_v34 = vadd.f32 %v289_v3, %v56_v26  ;;  %v77_v35 = vadd.f32 %v289_v3, %v57_v27 }
   0x8   :  { %v89_v30 = vmax.f32 %v73_v21, 0.0  ;;  %v90_v31 = vmax.f32 %v74_v22, 0.0  ;;  %v59_v36 = vmul.f32 %v284_v1, %v187_v29  ;;  %v219_v37 = vunpack.c.l.bf16 %v317_v25 }
   0x9   :  { %v91_v41 = vmax.f32 %v75_v32, 0.0  ;;  %v78_v42 = vadd.f32 %v289_v3, %v58_v33  ;;  %v92_v43 = vmax.f32 %v76_v34, 0.0  ;;  %v93_v44 = vmax.f32 %v77_v35, 0.0  ;;  %v250_v33 = vld [vmem:[%s423_s3 + $0x38] sm:$0xff]  }
   0xa   :  { %v137_v39 = vadd.f32 %v207_v6, %v89_v30  ;;  %v138_v40 = vadd.f32 %v208_v7, %v90_v31  ;;  %v79_v45 = vadd.f32 %v289_v3, %v59_v36  ;;  %v188_v46 = vunpack.c.h.bf16 %v239_v16 }
   0xb   :  { %v139_v47 = vadd.f32 %v211_v14, %v91_v41  ;;  %v94_v48 = vmax.f32 %v78_v42, 0.0  ;;  %v191_v49 = vunpack.c.l.bf16 %v240_v38  ;;  %v140_v52 = vadd.f32 %v212_v18, %v92_v43 }
   0xc   :  { %153 = vst [vmem:[%s424_s4] sm:$0xff] %v137_v39  ;;  %v141_v53 = vadd.f32 %v215_v20, %v93_v44  ;;  %v95_v54 = vmax.f32 %v79_v45, 0.0  ;;  %v60_v55 = vmul.f32 %v284_v1, %v188_v46  ;;  %v220_v57 = vunpack.c.h.bf16 %v317_v25 }
   0xd   :  { %154 = vst [vmem:[%s424_s4 + $0x8] sm:$0xff] %v138_v40  ;;  %v142_v56 = vadd.f32 %v216_v28, %v94_v48  ;;  %v61_v58 = vmul.f32 %v284_v1, %v191_v49  ;;  %v192_v59 = vunpack.c.h.bf16 %v240_v38  ;;  %v223_v0 = vunpack.c.l.bf16 %v247_v50 }
   0xe   :  { %155 = vst [vmem:[%s424_s4 + $0x10] sm:$0xff] %v139_v47  ;;  %v143_v62 = vadd.f32 %v219_v37, %v95_v54  ;;  %v80_v63 = vadd.f32 %v289_v3, %v60_v55  ;;  %v195_v2 = vunpack.c.l.bf16 %v241_v51  ;;  %v224_v6 = vunpack.c.h.bf16 %v247_v50 }
   0xf   :  { %156 = vst [vmem:[%s424_s4 + $0x18] sm:$0xff] %v140_v52  ;;  %v81_v4 = vadd.f32 %v289_v3, %v61_v58  ;;  %v62_v5 = vmul.f32 %v284_v1, %v192_v59  ;;  %v196_v7 = vunpack.c.h.bf16 %v241_v51  ;;  %v227_v10 = vunpack.c.l.bf16 %v248_v60 }
  0x10   :  { %157 = vst [vmem:[%s424_s4 + $0x20] sm:$0xff] %v141_v53  ;;  %v96_v8 = vmax.f32 %v80_v63, 0.0  ;;  %v63_v9 = vmul.f32 %v284_v1, %v195_v2  ;;  %v199_v11 = vunpack.c.l.bf16 %v242_v61  ;;  %v228_v16 = vunpack.c.h.bf16 %v248_v60 }
  0x11   :  { %158 = vst [vmem:[%s424_s4 + $0x28] sm:$0xff] %v142_v56  ;;  %v97_v13 = vmax.f32 %v81_v4, 0.0  ;;  %v82_v14 = vadd.f32 %v289_v3, %v62_v5  ;;  %v64_v15 = vmul.f32 %v284_v1, %v196_v7  ;;  %v200_v21 = vunpack.c.h.bf16 %v242_v61 }
  0x12   :  { %159 = vst [vmem:[%s424_s4 + $0x30] sm:$0xff] %v143_v62  ;;  %v144_v18 = vadd.f32 %v220_v57, %v96_v8  ;;  %v83_v19 = vadd.f32 %v289_v3, %v63_v9  ;;  %v65_v20 = vmul.f32 %v284_v1, %v199_v11  ;;  %v231_v25 = vunpack.c.l.bf16 %v249_v12 }
  0x13   :  { %v145_v22 = vadd.f32 %v223_v0, %v97_v13  ;;  %v98_v23 = vmax.f32 %v82_v14, 0.0  ;;  %v84_v24 = vadd.f32 %v289_v3, %v64_v15  ;;  %v66_v28 = vmul.f32 %v284_v1, %v200_v21 }
  0x14   :  { %160 = vst [vmem:[%s424_s4 + $0x38] sm:$0xff] %v144_v18  ;;  %v99_v26 = vmax.f32 %v83_v19, 0.0  ;;  %v85_v27 = vadd.f32 %v289_v3, %v65_v20  ;;  %v203_v29 = vunpack.c.l.bf16 %v243_v17  ;;  %v232_v32 = vunpack.c.h.bf16 %v249_v12 }
  0x15   :  { %161 = vst [vmem:[%s424_s4 + $0x40] sm:$0xff] %v145_v22  ;;  %v146_v30 = vadd.f32 %v224_v6, %v98_v23  ;;  %v100_v31 = vmax.f32 %v84_v24, 0.0  ;;  %v204_v34 = vunpack.c.h.bf16 %v243_v17  ;;  %v86_v37 = vadd.f32 %v289_v3, %v66_v28 }
  0x16   :  { %v147_v35 = vadd.f32 %v227_v10, %v99_v26  ;;  %v101_v36 = vmax.f32 %v85_v27, 0.0  ;;  %v67_v38 = vmul.f32 %v284_v1, %v203_v29  ;;  %v235_v44 = vunpack.c.l.bf16 %v250_v33 }
  0x17   :  { %162 = vst [vmem:[%s424_s4 + $0x48] sm:$0xff] %v146_v30  ;;  %v148_v39 = vadd.f32 %v228_v16, %v100_v31  ;;  %v68_v40 = vmul.f32 %v284_v1, %v204_v34  ;;  %v102_v42 = vmax.f32 %v86_v37, 0.0  ;;  %v236_v46 = vunpack.c.h.bf16 %v250_v33 }
  0x18   :  { %163 = vst [vmem:[%s424_s4 + $0x50] sm:$0xff] %v147_v35  ;;  %v149_v41 = vadd.f32 %v231_v25, %v101_v36  ;;  %v87_v43 = vadd.f32 %v289_v3, %v67_v38 }
  0x19   :  { %164 = vst [vmem:[%s424_s4 + $0x58] sm:$0xff] %v148_v39  ;;  %v88_v45 = vadd.f32 %v289_v3, %v68_v40  ;;  %v150_v1 = vadd.f32 %v232_v32, %v102_v42 }
  0x1a   :  { %165 = vst [vmem:[%s424_s4 + $0x60] sm:$0xff] %v149_v41  ;;  %v103_v47 = vmax.f32 %v87_v43, 0.0 }
  0x1b   :  { %v104_v48 = vmax.f32 %v88_v45, 0.0  ;;  %166 = vst [vmem:[%s424_s4 + $0x68] sm:$0xff] %v150_v1 }
  0x1c   :  { %v151_v49 = vadd.f32 %v235_v44, %v103_v47 }
  0x1d   :  { %v152_v50 = vadd.f32 %v236_v46, %v104_v48 }
  0x1e   :  { %167 = vst [vmem:[%s424_s4 + $0x70] sm:$0xff] %v151_v49 }
  0x1f   :  { %168 = vst [vmem:[%s424_s4 + $0x78] sm:$0xff] %v152_v50 }

</bundles_post_ra>
